<compile_context>
chip_gen: v6e
topology: v6e:2x2x1
jax: 0.10.0
libtpu: 0.0.40
codegen_flags: <defaults>
</compile_context>

<pallas_src>
import functools

import jax
import jax.numpy as jnp
from jax.experimental import pallas as pl
from jax.experimental.pallas import tpu as pltpu


# ---------------------------------------------------------------------------
# Small helpers
# ---------------------------------------------------------------------------
def _round_up(x, m):
    return (x + m - 1) // m * m


def _pad2d(a, rows, cols):
    r, c = a.shape
    if r == rows and c == cols:
        return a
    return jnp.zeros((rows, cols), a.dtype).at[:r, :c].set(a)


_TILE_B_CANDIDATES = (2048, 1024, 512, 256, 128, 64, 32, 16, 8)


def _pick_tile_b(batch):
    """Large batch tiles (multiples of 8) amortize per-grid-step overhead; when
    batch >= 16 keep at least 2 grid programs so the 'parallel' batch axis can be
    sharded across both v7x TensorCores. Batch is zero-padded to a tile multiple."""
    if batch < 16:
        return 8
    upper = batch // 2
    for cand in _TILE_B_CANDIDATES:
        if cand <= upper:
            return cand
    return 8


def _vmem_cap_bytes():
    """Generation-aware VMEM cap: ~48 MiB on v7x (64 MiB physical), ~96 MiB on
    v5e/v6e (128 MiB physical)."""
    try:
        phys = int(pltpu.get_tpu_info().vmem_capacity_bytes)
    except Exception:  # pragma: no cover - query unavailable: assume smallest (v7x)
        phys = 64 << 20
    return min(phys * 3 // 4, 100 << 20)


def _vmem_limit_bytes(tile_b, in_dim_p, out_dim_p, max_width_p, params):
    param_bytes = sum(
        w.size * w.dtype.itemsize + b.size * b.dtype.itemsize for w, b in params
    )
    req = (
        2 * tile_b * in_dim_p * 4        # double-buffered input tile (f32)
        + 2 * tile_b * out_dim_p * 4     # double-buffered output tile (f32)
        + 2 * param_bytes                # resident weights/biases (default 2 buffers)
        + 4 * tile_b * max_width_p * 4   # intermediates: h (f32), bf16 copy, y (f32), slack
    )
    req = int(req * 1.25) + (2 << 20)
    cap = _vmem_cap_bytes()
    limit = min(max(req, 16 << 20), cap)
    return max(limit, req)  # never clamp below the estimated requirement


# ---------------------------------------------------------------------------
# Fused kernel: relu(...relu(relu(x @ W1 + b1) @ W2 + b2)... )
# ---------------------------------------------------------------------------
def _make_fcbody_kernel(num_layers):
    def kernel(*refs):
        # refs = (x_ref, w1_ref, b1_ref, w2_ref, b2_ref, ..., o_ref)
        x_ref = refs[0]
        o_ref = refs[-1]
        wb_refs = refs[1:-1]

        h = x_ref[...]  # (tile_b, in_dim_p), f32
        for layer in range(num_layers):
            w_ref = wb_refs[2 * layer]
            b_ref = wb_refs[2 * layer + 1]
            # MXU matmul with bf16 operands and f32 accumulation.
            y = jnp.dot(
                h.astype(w_ref.dtype), w_ref[...],
                preferred_element_type=jnp.float32,
            )
            # Bias add + ReLU stay in f32 (fast VPU path on every generation).
            h = jnp.maximum(y + b_ref[...], 0.0)
        # Only the final (lane-dense, 128-multiple wide) activation goes to HBM.
        o_ref[...] = h.astype(o_ref.dtype)

    return kernel


# ---------------------------------------------------------------------------
# Wrapper
# ---------------------------------------------------------------------------
@functools.partial(jax.jit, static_argnames=("feature_dim",))
def fcbody_forward(x, params, *, feature_dim):
    """Fused FCBody forward. `params` must be the padded/bf16 params from
    prepare_fcbody_params(); `feature_dim` is the true (unpadded) output width."""
    batch, in_dim = x.shape
    num_layers = len(params)
    in_dim_p = params[0][0].shape[0]
    out_dim_p = params[-1][0].shape[1]

    tile_b = _pick_tile_b(batch)
    batch_p = _round_up(batch, tile_b)
    grid = (batch_p // tile_b,)

    # Zero-pad x: padded rows are sliced off; padded K-columns hit zero weight rows.
    x_p = _pad2d(x.astype(jnp.float32), batch_p, in_dim_p)

    in_specs = [pl.BlockSpec((tile_b, in_dim_p), lambda i: (i, 0))]
    flat_args = [x_p]
    for w, b in params:
        # Full-array blocks with constant index maps: weights/biases are loaded into
        # VMEM once and stay resident across every batch tile (no per-step re-DMA).
        in_specs.append(pl.BlockSpec(w.shape, lambda i: (0, 0)))
        in_specs.append(pl.BlockSpec(b.shape, lambda i: (0, 0)))
        flat_args.append(w)
        flat_args.append(b)

    out_specs = pl.BlockSpec((tile_b, out_dim_p), lambda i: (i, 0))

    max_width_p = max([in_dim_p] + [w.shape[1] for w, _ in params])
    vmem_limit = _vmem_limit_bytes(tile_b, in_dim_p, out_dim_p, max_width_p, params)

    param_bytes = sum(
        w.size * w.dtype.itemsize + b.size * b.dtype.itemsize for w, b in params
    )
    cost = pl.CostEstimate(
        flops=2 * batch_p * sum(w.shape[0] * w.shape[1] for w, _ in params),
        transcendentals=0,
        bytes_accessed=batch_p * in_dim_p * 4 + param_bytes + batch_p * out_dim_p * 4,
    )

    out_p = pl.pallas_call(
        _make_fcbody_kernel(num_layers),
        out_shape=jax.ShapeDtypeStruct((batch_p, out_dim_p), jnp.float32),
        grid_spec=pltpu.PrefetchScalarGridSpec(
            num_scalar_prefetch=0,
            grid=grid,
            in_specs=in_specs,
            out_specs=out_specs,
        ),
        compiler_params=pltpu.CompilerParams(
            dimension_semantics=("parallel",),  # batch axis: megacore-shardable, pipelined
            vmem_limit_bytes=int(vmem_limit),
        ),
        cost_estimate=cost,
    )(*flat_args)

    return out_p[:batch, :feature_dim]


# ---------------------------------------------------------------------------
# Parameter construction (matches torch orthogonal_ init + zero bias)
# ---------------------------------------------------------------------------
def orthogonal_init(key, shape, dtype=jnp.float32):
    """Deterministic orthogonal init matching torch.nn.init.orthogonal_ semantics."""
    rows, cols = shape
    n = max(rows, cols)
    a = jax.random.normal(key, (n, n), dtype=jnp.float32)
    q, r = jnp.linalg.qr(a)
    d = jnp.diag(r)
    q = q * jnp.where(d >= 0.0, 1.0, -1.0)
    return q[:rows, :cols].astype(dtype)


def make_fcbody_params(key, state_dim, hidden_units=(64, 64), w_scale=1.0):
    """Math-level (unpadded, f32) params: list of (W [in, out], b [out])."""
    dims = (state_dim,) + tuple(hidden_units)
    params = []
    for dim_in, dim_out in zip(dims[:-1], dims[1:]):
        key, sub = jax.random.split(key)
        # PyTorch weight is (out, in); store transposed as (in, out) for x @ W.
        w_torch = orthogonal_init(sub, (dim_out, dim_in)) * w_scale
        w = jnp.asarray(w_torch.T, dtype=jnp.float32)
        b = jnp.zeros((dim_out,), dtype=jnp.float32)
        params.append((w, b))
    return params


def prepare_fcbody_params(params):
    """Pad every layer's in/out width to a multiple of 128 lanes (zero rows/columns,
    numerically exact) and cast weights to bf16 for the MXU (biases stay f32)."""
    prepared = []
    for w, b in params:
        d_in, d_out = w.shape
        d_in_p, d_out_p = _round_up(d_in, 128), _round_up(d_out, 128)
        w_p = _pad2d(w.astype(jnp.bfloat16), d_in_p, d_out_p)
        b_p = _pad2d(b.reshape(1, d_out).astype(jnp.float32), 1, d_out_p)
        prepared.append((w_p, b_p))
    feature_dim = int(params[-1][0].shape[1])
    return prepared, feature_dim


if __name__ == "__main__":
    key = jax.random.PRNGKey(0)
    state_dim = 32
    hidden_units = (64, 64)
    batch = 6  # deliberately not a multiple of 8 to exercise batch padding/slicing

    kp, kx = jax.random.split(key)
    params = make_fcbody_params(kp, state_dim, hidden_units)
    x = jax.random.normal(kx, (batch, state_dim), dtype=jnp.float32)

    kernel_params, feature_dim = prepare_fcbody_params(params)
    out = fcbody_forward(x, kernel_params, feature_dim=feature_dim)
    jax.block_until_ready(out)

    assert out.shape == (batch, feature_dim)
    assert bool(jnp.all(out >= 0.0))  # ReLU output is non-negative

    # Reference 1: same math as the kernel (bf16 MXU operands, f32 accumulate/bias/ReLU).
    ref_bf16 = x
    for w, b in params:
        y = jnp.dot(
            ref_bf16.astype(jnp.bfloat16), w.astype(jnp.bfloat16),
            preferred_element_type=jnp.float32,
        ) + b
        ref_bf16 = jnp.maximum(y, 0.0)
    assert bool(jnp.allclose(out, ref_bf16, atol=1e-4, rtol=1e-4))

    # Reference 2: full-f32 PyTorch-equivalent forward (loose tolerance: bf16 operands).
    ref_f32 = x
    for w, b in params:
        ref_f32 = jnp.maximum(ref_f32 @ w + b, 0.0)
    assert bool(jnp.allclose(out, ref_f32, atol=5e-2, rtol=5e-2))

    print("KERNEL_OK")
</pallas_src>

<mosaic_0001>
module attributes {stable_mosaic.version = 11 : i64} {
  func.func @kernel(%arg0: i32, %arg1: memref<8x128xf32, #tpu.memory_space<vmem>>, %arg2: memref<128x128xbf16, #tpu.memory_space<vmem>>, %arg3: memref<1x128xf32, #tpu.memory_space<vmem>>, %arg4: memref<128x128xbf16, #tpu.memory_space<vmem>>, %arg5: memref<1x128xf32, #tpu.memory_space<vmem>>, %arg6: memref<8x128xf32, #tpu.memory_space<vmem>>) attributes {dimension_semantics = [#tpu.dimension_semantics<parallel>], iteration_bounds = array<i64: 1>, scalar_prefetch = 0 : i64, scratch_operands = 0 : i64, tpu.core_type = #tpu.core_type<tc>, window_params = [{transform_indices = @transform_0, window_bounds = array<i64: 8, 128>}, {pipeline_mode = #tpu.pipeline_mode<synchronous>, transform_indices = @transform_1, window_bounds = array<i64: 128, 128>}, {pipeline_mode = #tpu.pipeline_mode<synchronous>, transform_indices = @transform_2, window_bounds = array<i64: 1, 128>}, {pipeline_mode = #tpu.pipeline_mode<synchronous>, transform_indices = @transform_3, window_bounds = array<i64: 128, 128>}, {pipeline_mode = #tpu.pipeline_mode<synchronous>, transform_indices = @transform_4, window_bounds = array<i64: 1, 128>}, {transform_indices = @transform_5, window_bounds = array<i64: 8, 128>}]} {
    %c0 = arith.constant 0 : index
    %c0_0 = arith.constant 0 : index
    %0 = vector.load %arg1[%c0, %c0_0] : memref<8x128xf32, #tpu.memory_space<vmem>>, vector<8x128xf32>
    %1 = arith.truncf %0 : vector<8x128xf32> to vector<8x128xbf16>
    %c0_1 = arith.constant 0 : index
    %c0_2 = arith.constant 0 : index
    %2 = vector.load %arg2[%c0_1, %c0_2] : memref<128x128xbf16, #tpu.memory_space<vmem>>, vector<128x128xbf16>
    %cst = arith.constant dense<0.000000e+00> : vector<8x128xf32>
    %3 = tpu.matmul %1, %2, %cst {dimension_numbers = #tpu.dot_dimension_numbers<[1], [0], [0], [1], [0, 0, 1, 1], [], []>} : vector<8x128xbf16>, vector<128x128xbf16>, vector<8x128xf32> -> vector<8x128xf32>
    %c0_3 = arith.constant 0 : index
    %c0_4 = arith.constant 0 : index
    %4 = vector.load %arg3[%c0_3, %c0_4] : memref<1x128xf32, #tpu.memory_space<vmem>>, vector<1x128xf32>
    %5 = vector.broadcast %4 : vector<1x128xf32> to vector<8x128xf32>
    %6 = arith.addf %3, %5 : vector<8x128xf32>
    %cst_5 = arith.constant 0.000000e+00 : f32
    %7 = vector.broadcast %cst_5 : f32 to vector<8x128xf32>
    %8 = arith.maximumf %6, %7 : vector<8x128xf32>
    %9 = arith.truncf %8 : vector<8x128xf32> to vector<8x128xbf16>
    %c0_6 = arith.constant 0 : index
    %c0_7 = arith.constant 0 : index
    %10 = vector.load %arg4[%c0_6, %c0_7] : memref<128x128xbf16, #tpu.memory_space<vmem>>, vector<128x128xbf16>
    %cst_8 = arith.constant dense<0.000000e+00> : vector<8x128xf32>
    %11 = tpu.matmul %9, %10, %cst_8 {dimension_numbers = #tpu.dot_dimension_numbers<[1], [0], [0], [1], [0, 0, 1, 1], [], []>} : vector<8x128xbf16>, vector<128x128xbf16>, vector<8x128xf32> -> vector<8x128xf32>
    %c0_9 = arith.constant 0 : index
    %c0_10 = arith.constant 0 : index
    %12 = vector.load %arg5[%c0_9, %c0_10] : memref<1x128xf32, #tpu.memory_space<vmem>>, vector<1x128xf32>
    %13 = vector.broadcast %12 : vector<1x128xf32> to vector<8x128xf32>
    %14 = arith.addf %11, %13 : vector<8x128xf32>
    %cst_11 = arith.constant 0.000000e+00 : f32
    %15 = vector.broadcast %cst_11 : f32 to vector<8x128xf32>
    %16 = arith.maximumf %14, %15 : vector<8x128xf32>
    %c0_12 = arith.constant 0 : index
    %c0_13 = arith.constant 0 : index
    %17 = vector.load %arg6[%c0_12, %c0_13] : memref<8x128xf32, #tpu.memory_space<vmem>>, vector<8x128xf32>
    tpu.vector_store %arg6[%c0_12, %c0_13], %16 {strides = array<i32>} : memref<8x128xf32, #tpu.memory_space<vmem>>, vector<8x128xf32>,
    return
  }
  func.func @transform_0(%arg0: i32) -> (i32, i32) {
    %c0_i32 = arith.constant 0 : i32
    %c0_i32_0 = arith.constant 0 : i32
    return %arg0, %c0_i32 : i32, i32
  }
  func.func @transform_1(%arg0: i32) -> (i32, i32) {
    %c0_i32 = arith.constant 0 : i32
    %c0_i32_0 = arith.constant 0 : i32
    %c0_i32_1 = arith.constant 0 : i32
    return %c0_i32, %c0_i32_0 : i32, i32
  }
  func.func @transform_2(%arg0: i32) -> (i32, i32) {
    %c0_i32 = arith.constant 0 : i32
    %c0_i32_0 = arith.constant 0 : i32
    %c0_i32_1 = arith.constant 0 : i32
    return %c0_i32, %c0_i32_0 : i32, i32
  }
  func.func @transform_3(%arg0: i32) -> (i32, i32) {
    %c0_i32 = arith.constant 0 : i32
    %c0_i32_0 = arith.constant 0 : i32
    %c0_i32_1 = arith.constant 0 : i32
    return %c0_i32, %c0_i32_0 : i32, i32
  }
  func.func @transform_4(%arg0: i32) -> (i32, i32) {
    %c0_i32 = arith.constant 0 : i32
    %c0_i32_0 = arith.constant 0 : i32
    %c0_i32_1 = arith.constant 0 : i32
    return %c0_i32, %c0_i32_0 : i32, i32
  }
  func.func @transform_5(%arg0: i32) -> (i32, i32) {
    %c0_i32 = arith.constant 0 : i32
    %c0_i32_0 = arith.constant 0 : i32
    return %arg0, %c0_i32 : i32, i32
  }
}

</mosaic_0001>

<bundles_post_ra>
// kernel: fcbody_forward.1
= control target key start
LH: loop header
LB: loop body
LE: loop exit
PB: predicated region body
PF: predicated region fallthrough
CT: control target
= control target key end

     0   :  { %10 = vsyncpa [#allocation3], 0  ;;  %s514_s0 = inlined_call_operand.vmem [shape: f32[8,128], index: 0, kind: input, shape index: {}]   ;;  %s515_s1 = inlined_call_operand.hbm [shape: bf16[128,128], index: 1, kind: input, shape index: {}]   ;;  %s516_s2 = inlined_call_operand.vmem [shape: f32[1,128], index: 2, kind: input, shape index: {}]   ;;  %s517_s3 = inlined_call_operand.hbm [shape: bf16[128,128], index: 3, kind: input, shape index: {}]   ;;  %s518_s4 = inlined_call_operand.vmem [shape: f32[1,128], index: 4, kind: input, shape index: {}]   ;;  %s519_s5 = inlined_call_operand.hbm [shape: f32[8,128], index: 5, kind: output, shape index: {}]  }
   0x1   :  { %11 = vsyncpa [#allocation6], 0 }
   0x2   :  { %12 = vsyncpa [#allocation4], 0  ;;  %s459_s18 = smov [#allocation2]  }
   0x3   :  { %s20_s19 = sshll.u32 %s459_s18, 4  ;;  %s21_s19 = int_to_ptr.vmem [resolvable:$true] %s20_s19 }
   0x4   :  { %s401_s20 = scalar_lea.vmem %s21_s19, 1024  ;;  %p406_p1 = scmp.lt.s32.totalorder %s21_s19, %s21_s19 }
   0x5   :  { %p402_p0 = scmp.ne.s32.totalorder %s21_s19, %s401_s20  ;;  %p407_p2 = scmp.lt.s32.totalorder %s401_s20, %s401_s20 }
   0x7   :  { %p408_p3 = por %p407_p2, %p406_p1 }
   0x9   :  { %p409_p4 = pnand %p408_p3, %p402_p0 }
   0xb   :  { %412 = shalt.err (!%p409_p4)
}
   0xc   :  { %s460_s21 = smov 64   ;;  %s461_s22 = smov 4  }
   0xd   :  { %26 = dma.hbm_to_vmem [thread:$0]  %s515_s1, 1024, %s21_s19, [#allocation3], %s460_s21, %s460_s21, %s461_s22  }
   0xe   :  { %s462_s25 = smov [#allocation5]  }
   0xf   :  { %s34_s26 = sshll.u32 %s462_s25, 4  ;;  %s35_s26 = int_to_ptr.vmem [resolvable:$true] %s34_s26 }
  0x10   :  { %s421_s27 = scalar_lea.vmem %s35_s26, 1024  ;;  %p426_p6 = scmp.lt.s32.totalorder %s35_s26, %s35_s26 }
  0x11   :  { %p422_p5 = scmp.ne.s32.totalorder %s35_s26, %s421_s27  ;;  %p427_p7 = scmp.lt.s32.totalorder %s421_s27, %s421_s27 }
  0x13   :  { %p428_p8 = por %p427_p7, %p426_p6 }
  0x15   :  { %p429_p9 = pnand %p428_p8, %p422_p5 }
  0x17   :  { %432 = shalt.err (!%p429_p9)
}
  0x18   :  { %40 = dma.hbm_to_vmem [thread:$0]  %s517_s3, 1024, %s35_s26, [#allocation6], %s460_s21, %s460_s21, %s461_s22  }
  0x19   :  { %453 = dma.done.wait [#allocation3], 1024  }
  0x1a   :  { %454 = vsyncadd [#allocation3], 4294966272 }
  0x1b   :  { %455 = dma.done.wait [#allocation6], 1024  }
  0x1c   :  { %456 = vsyncadd [#allocation6], 4294966272  ;;  %v463_v0 = vmov 0.0   ;;  %vm464_vm0 = vmmov 0   ;;  %v377_v1 = vld [vmem:[#allocation2 + $0x38] sm:$0xff]   ;;  %v378_v2 = vld [vmem:[#allocation2 + $0x30] sm:$0xff]  }
  0x1d   :  { %330 = vmatprep.subr.bf16.mxu0 %v463_v0  ;;  %346 = vmatprep.mubr.msk.bf16.mxu0 %vm464_vm0, %v463_v0  ;;  %v379_v3 = vld [vmem:[#allocation2 + $0x28] sm:$0xff]   ;;  %v385_v4 = vld [vmem:[#allocation5 + $0x38] sm:$0xff]   ;;  %v380_v5 = vld [vmem:[#allocation2 + $0x20] sm:$0xff]   ;;  %s465_s8 = smov [#allocation7]  }
  0x1e   :  { %350 = vmatprep.subr.bf16.mxu1 %v463_v0  ;;  %366 = vmatprep.mubr.msk.bf16.mxu1 %vm464_vm0, %v463_v0  ;;  %v386_v6 = vld [vmem:[#allocation5 + $0x30] sm:$0xff]   ;;  %v381_v7 = vld [vmem:[#allocation2 + $0x18] sm:$0xff]   ;;  %v387_v8 = vld [vmem:[#allocation5 + $0x28] sm:$0xff]   ;;  %s284_s9 = sshll.u32 %s465_s8, 4  ;;  %s285_s9 = int_to_ptr.vmem [resolvable:$true] %s284_s9 }
  0x1f   :  { %331 = vmatpush3.bf16.msra.mxu0 %v377_v1  ;;  %351 = vmatpush3.bf16.msra.mxu1 %v385_v4  ;;  %v382_v9 = vld [vmem:[#allocation2 + $0x10] sm:$0xff]   ;;  %v388_v10 = vld [vmem:[#allocation5 + $0x20] sm:$0xff]   ;;  %v383_v11 = vld [vmem:[#allocation2 + $0x8] sm:$0xff]   ;;  %p438_p11 = scmp.lt.s32.totalorder %s285_s9, %s285_s9 }
  0x20   :  { %332 = vmatprep.subr.bf16.mxu0 %v463_v0  ;;  %352 = vmatprep.subr.bf16.mxu1 %v463_v0  ;;  %v389_v12 = vld [vmem:[#allocation5 + $0x18] sm:$0xff]   ;;  %v384_v13 = vld [vmem:[#allocation2] sm:$0xff]   ;;  %v390_v15 = vld [vmem:[#allocation5 + $0x10] sm:$0xff]  }
  0x21   :  { %v50_v14 = vld [vmem:[%s514_s0] sm:$0xff]  ;;  %v391_v17 = vld [vmem:[#allocation5 + $0x8] sm:$0xff]  }
  0x22   :  { %v51_v16 = vpack.c.bf16 %v50_v14, %v50_v14  ;;  %v392_v18 = vld [vmem:[#allocation5] sm:$0xff]  }
  0x23   :  { %333 = vmatpush3.bf16.msra.mxu0 %v378_v2  ;;  %353 = vmatpush3.bf16.msra.mxu1 %v386_v6  ;;  %v294_v19 = vld [vmem:[%s516_s2] ss:$0 sm:$0xff]  ;;  %s433_s2 = scalar_lea.vmem %s285_s9, 128 }
  0x24   :  { %334 = vmatprep.subr.bf16.mxu0 %v463_v0  ;;  %354 = vmatprep.subr.bf16.mxu1 %v463_v0  ;;  %v303_v27 = vld [vmem:[%s518_s4] ss:$0 sm:$0xff]  ;;  %p434_p10 = scmp.ne.s32.totalorder %s285_s9, %s433_s2  ;;  %p439_p12 = scmp.lt.s32.totalorder %s433_s2, %s433_s2 }
  0x26   :  { %p440_p13 = por %p439_p12, %p438_p11 }
  0x27   :  { %335 = vmatpush3.bf16.msra.mxu0 %v379_v3  ;;  %355 = vmatpush3.bf16.msra.mxu1 %v387_v8 }
  0x28   :  { %336 = vmatprep.subr.bf16.mxu0 %v463_v0  ;;  %356 = vmatprep.subr.bf16.mxu1 %v463_v0  ;;  %p441_p0 = pnand %p440_p13, %p434_p10 }
  0x2b   :  { %337 = vmatpush3.bf16.msra.mxu0 %v380_v5  ;;  %357 = vmatpush3.bf16.msra.mxu1 %v388_v10 }
  0x2c   :  { %338 = vmatprep.subr.bf16.mxu0 %v463_v0  ;;  %358 = vmatprep.subr.bf16.mxu1 %v463_v0 }
  0x2f   :  { %339 = vmatpush3.bf16.msra.mxu0 %v381_v7  ;;  %359 = vmatpush3.bf16.msra.mxu1 %v389_v12 }
  0x30   :  { %340 = vmatprep.subr.bf16.mxu0 %v463_v0  ;;  %360 = vmatprep.subr.bf16.mxu1 %v463_v0 }
  0x33   :  { %341 = vmatpush3.bf16.msra.mxu0 %v382_v9  ;;  %361 = vmatpush3.bf16.msra.mxu1 %v390_v15 }
  0x34   :  { %342 = vmatprep.subr.bf16.mxu0 %v463_v0  ;;  %362 = vmatprep.subr.bf16.mxu1 %v463_v0 }
  0x37   :  { %343 = vmatpush3.bf16.msra.mxu0 %v383_v11  ;;  %363 = vmatpush3.bf16.msra.mxu1 %v391_v17 }
  0x38   :  { %344 = vmatprep.subr.bf16.mxu0 %v463_v0  ;;  %364 = vmatprep.subr.bf16.mxu1 %v463_v0 }
  0x3b   :  { %345 = vmatpush3.bf16.msra.mxu0 %v384_v13  ;;  %365 = vmatpush3.bf16.msra.mxu1 %v392_v18 }
  0x3e   :  { %347 = vmatmul.mubr.bf16.vlgmr.msra.gmra.mxu0 %v51_v16 }
  0xfe   :  { %v157_v20 = vpop.f32.mrf.mxu0 }
  0xff   :  { %v158_v21 = vadd.f32 %v294_v19, %v157_v20 }
 0x100   :  { %v348_v22 = vpop.f32.mrf.mxu0 }
 0x101   :  { %v163_v23 = vmax.f32 %v158_v21, 0.0 }
 0x102   :  { %v160_v24 = vpop.f32.mrf.mxu0 }
 0x103   :  { %v164_v25 = vpack.c.bf16 %v163_v23, %v163_v23 }
 0x104   :  { %v349_v26 = vpop.f32.mrf.mxu0 }
 0x105   :  { %367 = vmatmul.mubr.bf16.vlgmr.msra.gmra.mxu1 %v164_v25 }
 0x1c5   :  { %v270_v28 = vpop.f32.mrf.mxu1 }
 0x1c6   :  { %v271_v29 = vadd.f32 %v303_v27, %v270_v28 }
 0x1c7   :  { %v368_v30 = vpop.f32.mrf.mxu1 }
 0x1c8   :  { %v276_v31 = vmax.f32 %v271_v29, 0.0 }
 0x1c9   :  { %v273_v32 = vpop.f32.mrf.mxu1 }
 0x1ca   :  { %277 = vst [vmem:[#allocation7] sm:$0xff] %v276_v31 }
 0x1cb   :  { %v369_v33 = vpop.f32.mrf.mxu1 }
 0x1cc   :  { %444 = shalt.err (!%p441_p0)
}
 0x1cd   :  { %287 = dma.vmem_to_hbm [thread:$0]  %s285_s9, 128, %s519_s5, [#allocation4]  }
 0x1ce   :  { %457 = dma.done.wait [#allocation4], 128  }
 0x1cf   :  { %458 = vsyncadd [#allocation4], 4294967168 }
 0x1d0   :  { %291 = vsyncpa [#allocation3], 1 }
 0x1d1   :  { %292 = vsyncpa [#allocation6], 1 }
 0x1d2   :  { %293 = vsyncpa [#allocation4], 1 }

</bundles_post_ra>
